<compile_context>
chip_gen: v7x
topology: tpu7x:2x2x1
jax: 0.10.0
libtpu: 0.0.40
codegen_flags: <defaults>
</compile_context>

<pallas_src>
import functools

import jax
import jax.numpy as jnp
from jax import lax
from jax.experimental import pallas as pl
from jax.experimental.pallas import tpu as pltpu


def _ce2d_kernel(pred_ref, tgt_ref, w_ref, loss_ref, wsum_ref,
                 acc_loss, acc_w, *, ignore_label, hw, tp, tiles_per_split,
                 need_pixel_mask, has_weight):
    j = pl.program_id(2)

    # init per-(batch, split) accumulators at the start of each pixel sweep
    @pl.when(j == 0)
    def _():
        acc_loss[...] = jnp.zeros_like(acc_loss)
        acc_w[...] = jnp.zeros_like(acc_w)

    logits = pred_ref[...]                 # (C, TP), native dtype (f32 or bf16)
    tgt = tgt_ref[...]                     # (1, TP) int32
    c = logits.shape[0]

    # valid-target mask (module semantics: >= 0 and != ignore_label)
    valid = (tgt >= 0) & (tgt != ignore_label)           # (1, TP)

    if need_pixel_mask:
        # global pixel index < true pixel count (handles the partial edge tile
        # and any duplicated clamp-tile from the pixel split)
        s = pl.program_id(1)
        gt = s * tiles_per_split + j
        pix = gt * tp + lax.broadcasted_iota(jnp.int32, (1, tp), 1)
        valid = valid & (pix < hw)

    # class-axis (sublane) max + one-hot gather in the native dtype; upcast to
    # f32 only for the exp / log-sum-exp path.
    #   loss = log(sum exp(x - mx)) - (x_t - mx)
    mx = jnp.max(logits, axis=0, keepdims=True)                       # (1, TP)
    shifted = (logits - mx).astype(jnp.float32)                       # (C, TP)
    lse = jnp.log(jnp.sum(jnp.exp(shifted), axis=0, keepdims=True))   # (1, TP)

    cls = lax.broadcasted_iota(jnp.int32, (c, 1), 0)                  # (C, 1)
    onehot = cls == tgt                                               # (C, TP)
    tgt_logit = jnp.sum(jnp.where(onehot, shifted, 0.0), axis=0, keepdims=True)
    nll = lse - tgt_logit                                             # (1, TP)

    # Masking goes through jnp.where on the contribution so garbage overhang
    # values never reach the accumulators.  Lane-wide VPU adds only; the
    # cross-lane reduce happens once, in the epilogue.
    if has_weight:
        wvec = w_ref[...].astype(jnp.float32)                         # (C, 1)
        # TODO(synk): if the bundle dump shows the XLU saturating (bf16 / v7x),
        # move this sublane reduce to the idle MXU via w^T(1,C) @ onehot(C,TP).
        tgt_w = jnp.sum(jnp.where(onehot, wvec, 0.0), axis=0, keepdims=True)
        acc_loss[...] += jnp.where(valid, nll * tgt_w, 0.0)
        acc_w[...] += jnp.where(valid, tgt_w, 0.0)
    else:
        acc_loss[...] += jnp.where(valid, nll, 0.0)
        acc_w[...] += valid.astype(jnp.float32)

    @pl.when(j == pl.num_programs(2) - 1)
    def _():
        loss_ref[...] = jnp.sum(acc_loss[...], keepdims=True)   # (1, 1)
        wsum_ref[...] = jnp.sum(acc_w[...], keepdims=True)      # (1, 1)


def _vmem_capacity_bytes():
    try:
        return int(pltpu.get_tpu_info().vmem_capacity_bytes)
    except Exception:
        return 64 << 20   # conservative fallback (v7x per-TensorCore VMEM)


def cross_entropy_2d(predict, target, weight=None, ignore_label=255,
                     tile_pixels=None):
    """predict: (n, c, h, w) float; target: (n, h, w) int; weight: (c,) or None."""
    n, c, h, w = predict.shape
    hw = h * w

    # free reshapes only -- keep native dtype (bf16 stays bf16) and NCHW order
    pred3d = predict.reshape(n, c, hw)
    tgt3d = target.reshape(n, 1, hw).astype(jnp.int32)

    has_weight = weight is not None
    if weight is None:
        weight = jnp.ones((c,), jnp.float32)
    w2d = jnp.asarray(weight, jnp.float32).reshape(c, 1)

    itemsize = jnp.dtype(pred3d.dtype).itemsize
    vmem_cap = _vmem_capacity_bytes()

    # --- pixel tile sizing: lane-dense multiple of 128, sized from VMEM budget
    if tile_pixels is None:
        budget = min(vmem_cap // 2, 64 << 20)           # per-generation headroom
        per_pixel = 2 * (c * itemsize + 4) + 8          # dbl-buf pred+tgt + 2 f32 acc
        tp_budget = (budget - (1 << 20)) // per_pixel
        tp_target = (4 << 20) // max(c * itemsize, 1)   # ~4 MiB logits block
        tp_cand = max(128, min(tp_budget, tp_target))
    else:
        tp_cand = max(128, int(tile_pixels))
    tp = hw if hw <= tp_cand else (tp_cand // 128) * 128

    num_pt = pl.cdiv(hw, tp)
    # pixel split keeps both v7x TensorCores busy when the batch axis is 1
    splits = 2 if (n < 2 and num_pt >= 2) else 1
    tiles_per_split = pl.cdiv(num_pt, splits)
    has_dup = splits * tiles_per_split > num_pt
    need_pixel_mask = has_dup or (num_pt * tp != hw)

    if has_dup:
        # clamp the (rare) duplicated tile of an odd split; its contribution is
        # fully masked in-kernel via the global pixel-index check
        def pix_block(s, j):
            return jnp.minimum(s * tiles_per_split + j, num_pt - 1)
    else:
        def pix_block(s, j):
            return s * tiles_per_split + j

    # --- VMEM accounting: fail loudly instead of silently under-provisioning
    pred_blk = c * tp * itemsize
    tgt_blk = tp * 4
    vmem_need = 2 * (pred_blk + tgt_blk) + c * 4 + 2 * tp * 4 + (1 << 20)
    if vmem_need > vmem_cap:
        raise ValueError(
            f"cross_entropy_2d: a {tp}-pixel tile needs ~{vmem_need} bytes of "
            f"VMEM but this chip only has {vmem_cap}; lower tile_pixels.")
    vmem_limit = int(max(vmem_need, 16 << 20))

    kernel = functools.partial(
        _ce2d_kernel, ignore_label=ignore_label, hw=hw, tp=tp,
        tiles_per_split=tiles_per_split, need_pixel_mask=need_pixel_mask,
        has_weight=has_weight)

    total_pix = n * hw
    cost = pl.CostEstimate(
        flops=6 * total_pix * c,
        transcendentals=total_pix * c,
        bytes_accessed=(total_pix * c * itemsize + total_pix * 4 + c * 4))

    loss_parts, wsum_parts = pl.pallas_call(
        kernel,
        out_shape=(jax.ShapeDtypeStruct((n, splits, 1, 1), jnp.float32),
                   jax.ShapeDtypeStruct((n, splits, 1, 1), jnp.float32)),
        grid_spec=pltpu.PrefetchScalarGridSpec(
            num_scalar_prefetch=0,
            grid=(n, splits, tiles_per_split),
            in_specs=[
                pl.BlockSpec((None, c, tp), lambda b, s, j: (b, 0, pix_block(s, j))),
                pl.BlockSpec((None, 1, tp), lambda b, s, j: (b, 0, pix_block(s, j))),
                pl.BlockSpec((c, 1), lambda b, s, j: (0, 0)),
            ],
            out_specs=[
                pl.BlockSpec((None, None, 1, 1), lambda b, s, j: (b, s, 0, 0)),
                pl.BlockSpec((None, None, 1, 1), lambda b, s, j: (b, s, 0, 0)),
            ],
            scratch_shapes=[pltpu.VMEM((1, tp), jnp.float32),
                            pltpu.VMEM((1, tp), jnp.float32)],
        ),
        compiler_params=pltpu.CompilerParams(
            dimension_semantics=("parallel", "parallel", "arbitrary"),
            vmem_limit_bytes=vmem_limit),
        cost_estimate=cost,
    )(pred3d, tgt3d, w2d)

    loss_sum = jnp.sum(loss_parts)
    w_sum = jnp.sum(wsum_parts)
    # PyTorch returns zeros(1) if there are no valid targets; emulate with 0.0.
    return jnp.where(w_sum > 0, loss_sum / jnp.maximum(w_sum, 1e-30), 0.0)


def _reference(predict, target, weight, ignore_label):
    """Pure-JAX reference matching F.cross_entropy(reduction='mean') semantics."""
    n, c, h, w = predict.shape
    p = jnp.transpose(predict, (0, 2, 3, 1)).reshape(-1, c).astype(jnp.float32)
    t = target.reshape(-1)
    valid = jnp.logical_and(t >= 0, t != ignore_label)
    t_safe = jnp.where(valid, t, 0)
    logp = jax.nn.log_softmax(p, axis=-1)
    nll = -jnp.take_along_axis(logp, t_safe[:, None], axis=-1)[:, 0]
    wt = weight[t_safe]
    num = jnp.sum(nll * wt * valid)
    den = jnp.sum(wt * valid)
    return num / den


if __name__ == "__main__":
    key = jax.random.PRNGKey(0)
    keys = jax.random.split(key, 9)
    ignore_label = 255

    # --- test 1: module-sized shapes, auto (full-extent) tile, per-class weights
    n, c, h, w = 2, 4, 16, 16
    predict = jax.random.normal(keys[0], (n, c, h, w), jnp.float32)
    target = jax.random.randint(keys[1], (n, h, w), 0, c).astype(jnp.int32)
    drop = jax.random.bernoulli(keys[2], 0.2, (n, h, w))
    target = jnp.where(drop, jnp.int32(ignore_label), target)
    weight = jnp.array([1.0, 0.5, 2.0, 1.5], jnp.float32)

    loss = jax.block_until_ready(
        cross_entropy_2d(predict, target, weight=weight, ignore_label=ignore_label))
    ref = _reference(predict, target, weight, ignore_label)
    assert jnp.allclose(loss, ref, rtol=1e-5, atol=1e-5), (loss, ref)

    # --- test 2: n=1 (pixel split -> both v7x TCs), non-128-multiple pixel
    #             count, partial edge tile, unweighted
    n2, c2, h2, w2 = 1, 5, 20, 20          # hw=400 -> 4 tiles of 128, 2 splits
    predict2 = jax.random.normal(keys[3], (n2, c2, h2, w2), jnp.float32)
    target2 = jax.random.randint(keys[4], (n2, h2, w2), 0, c2).astype(jnp.int32)
    drop2 = jax.random.bernoulli(keys[5], 0.3, (n2, h2, w2))
    target2 = jnp.where(drop2, jnp.int32(ignore_label), target2)

    loss2 = jax.block_until_ready(
        cross_entropy_2d(predict2, target2, weight=None,
                         ignore_label=ignore_label, tile_pixels=128))
    ref2 = _reference(predict2, target2, jnp.ones((c2,), jnp.float32), ignore_label)
    assert jnp.allclose(loss2, ref2, rtol=1e-5, atol=1e-5), (loss2, ref2)

    # --- test 3: odd tile count with pixel split (duplicate-tile clamp path),
    #             bf16 logits (native-dtype max / one-hot path), weighted
    n3, c3, h3, w3 = 1, 3, 20, 32          # hw=640 -> 5 tiles of 128, 2 splits
    predict3 = jax.random.normal(keys[6], (n3, c3, h3, w3),
                                 jnp.float32).astype(jnp.bfloat16)
    target3 = jax.random.randint(keys[7], (n3, h3, w3), 0, c3).astype(jnp.int32)
    drop3 = jax.random.bernoulli(keys[8], 0.25, (n3, h3, w3))
    target3 = jnp.where(drop3, jnp.int32(ignore_label), target3)
    weight3 = jnp.array([0.7, 1.3, 2.0], jnp.float32)

    loss3 = jax.block_until_ready(
        cross_entropy_2d(predict3, target3, weight=weight3,
                         ignore_label=ignore_label, tile_pixels=128))
    ref3 = _reference(predict3.astype(jnp.float32), target3, weight3, ignore_label)
    assert jnp.allclose(loss3, ref3, rtol=5e-2, atol=5e-2), (loss3, ref3)

    print("KERNEL_OK")
</pallas_src>

<mosaic_0001>
module attributes {stable_mosaic.version = 11 : i64} {
  func.func @_ce2d_kernel(%arg0: i32, %arg1: i32, %arg2: i32, %arg3: memref<1x4x256xf32, #tpu.memory_space<vmem>>, %arg4: memref<1x1x256xi32, #tpu.memory_space<vmem>>, %arg5: memref<4x1xf32, #tpu.memory_space<vmem>>, %arg6: memref<1x1x1x1xf32, #tpu.memory_space<vmem>>, %arg7: memref<1x1x1x1xf32, #tpu.memory_space<vmem>>, %arg8: memref<1x256xf32, #tpu.memory_space<vmem>>, %arg9: memref<1x256xf32, #tpu.memory_space<vmem>>) attributes {dimension_semantics = [#tpu.dimension_semantics<parallel>, #tpu.dimension_semantics<parallel>, #tpu.dimension_semantics<arbitrary>], iteration_bounds = array<i64: 2, 1, 1>, scalar_prefetch = 0 : i64, scratch_operands = 2 : i64, tpu.core_type = #tpu.core_type<tc>, window_params = [{transform_indices = @transform_0, window_bounds = array<i64: 1, 4, 256>}, {transform_indices = @transform_1, window_bounds = array<i64: 1, 1, 256>}, {pipeline_mode = #tpu.pipeline_mode<synchronous>, transform_indices = @transform_2, window_bounds = array<i64: 4, 1>}, {transform_indices = @transform_3, window_bounds = array<i64: 1, 1, 1, 1>}, {transform_indices = @transform_4, window_bounds = array<i64: 1, 1, 1, 1>}]} {
    %c0_i32 = arith.constant 0 : i32
    %0 = arith.cmpi eq, %arg2, %c0_i32 : i32
    %1 = arith.extui %0 : i1 to i32
    %c0_i32_0 = arith.constant 0 : i32
    %2 = arith.cmpi ne, %1, %c0_i32_0 : i32
    scf.if %2 {
      %cst_26 = arith.constant 0.000000e+00 : f32
      %50 = vector.broadcast %cst_26 : f32 to vector<1x256xf32>
      %c0_27 = arith.constant 0 : index
      %c0_28 = arith.constant 0 : index
      %51 = vector.load %arg8[%c0_27, %c0_28] : memref<1x256xf32, #tpu.memory_space<vmem>>, vector<1x256xf32>
      tpu.vector_store %arg8[%c0_27, %c0_28], %50 {strides = array<i32>} : memref<1x256xf32, #tpu.memory_space<vmem>>, vector<1x256xf32>,
      %cst_29 = arith.constant 0.000000e+00 : f32
      %52 = vector.broadcast %cst_29 : f32 to vector<1x256xf32>
      %c0_30 = arith.constant 0 : index
      %c0_31 = arith.constant 0 : index
      %53 = vector.load %arg9[%c0_30, %c0_31] : memref<1x256xf32, #tpu.memory_space<vmem>>, vector<1x256xf32>
      tpu.vector_store %arg9[%c0_30, %c0_31], %52 {strides = array<i32>} : memref<1x256xf32, #tpu.memory_space<vmem>>, vector<1x256xf32>,
    } else {
    }
    %c0 = arith.constant 0 : index
    %c0_1 = arith.constant 0 : index
    %c0_2 = arith.constant 0 : index
    %3 = vector.load %arg3[%c0, %c0_1, %c0_2] : memref<1x4x256xf32, #tpu.memory_space<vmem>>, vector<1x4x256xf32>
    %4 = vector.shape_cast %3 : vector<1x4x256xf32> to vector<4x256xf32>
    %c0_3 = arith.constant 0 : index
    %c0_4 = arith.constant 0 : index
    %c0_5 = arith.constant 0 : index
    %5 = vector.load %arg4[%c0_3, %c0_4, %c0_5] : memref<1x1x256xi32, #tpu.memory_space<vmem>>, vector<1x1x256xi32>
    %6 = vector.shape_cast %5 : vector<1x1x256xi32> to vector<1x256xi32>
    %c0_i32_6 = arith.constant 0 : i32
    %7 = vector.broadcast %c0_i32_6 : i32 to vector<1x256xi32>
    %8 = arith.cmpi sge, %6, %7 : vector<1x256xi32>
    %c255_i32 = arith.constant 255 : i32
    %9 = vector.broadcast %c255_i32 : i32 to vector<1x256xi32>
    %10 = arith.cmpi ne, %6, %9 : vector<1x256xi32>
    %11 = arith.andi %8, %10 : vector<1x256xi1>
    %cst = arith.constant dense<0xFF800000> : vector<256xf32>
    %12 = vector.multi_reduction <maximumf>, %4, %cst [0] : vector<4x256xf32> to vector<256xf32>
    %13 = vector.shape_cast %12 : vector<256xf32> to vector<1x256xf32>
    %14 = vector.broadcast %13 : vector<1x256xf32> to vector<4x256xf32>
    %15 = arith.subf %4, %14 : vector<4x256xf32>
    %16 = math.exp %15 : vector<4x256xf32>
    %cst_7 = arith.constant dense<0.000000e+00> : vector<256xf32>
    %17 = vector.multi_reduction <add>, %16, %cst_7 [0] : vector<4x256xf32> to vector<256xf32>
    %18 = vector.shape_cast %17 : vector<256xf32> to vector<1x256xf32>
    %19 = math.log %18 : vector<1x256xf32>
    %20 = tpu.iota {dimensions = array<i32: 0>} : vector<4x1xi32>
    %21 = vector.broadcast %20 : vector<4x1xi32> to vector<4x256xi32>
    %22 = vector.broadcast %6 : vector<1x256xi32> to vector<4x256xi32>
    %23 = arith.cmpi eq, %21, %22 : vector<4x256xi32>
    %cst_8 = arith.constant 0.000000e+00 : f32
    %24 = vector.broadcast %cst_8 : f32 to vector<4x256xf32>
    %25 = arith.select %23, %15, %24 : vector<4x256xi1>, vector<4x256xf32>
    %cst_9 = arith.constant dense<0.000000e+00> : vector<256xf32>
    %26 = vector.multi_reduction <add>, %25, %cst_9 [0] : vector<4x256xf32> to vector<256xf32>
    %27 = vector.shape_cast %26 : vector<256xf32> to vector<1x256xf32>
    %28 = arith.subf %19, %27 : vector<1x256xf32>
    %c0_10 = arith.constant 0 : index
    %c0_11 = arith.constant 0 : index
    %29 = vector.load %arg5[%c0_10, %c0_11] : memref<4x1xf32, #tpu.memory_space<vmem>>, vector<4x1xf32>
    %cst_12 = arith.constant 0.000000e+00 : f32
    %30 = vector.shape_cast %29 : vector<4x1xf32> to vector<4x1xf32>
    %31 = vector.broadcast %30 : vector<4x1xf32> to vector<4x256xf32>
    %32 = vector.broadcast %cst_12 : f32 to vector<4x256xf32>
    %33 = arith.select %23, %31, %32 : vector<4x256xi1>, vector<4x256xf32>
    %cst_13 = arith.constant dense<0.000000e+00> : vector<256xf32>
    %34 = vector.multi_reduction <add>, %33, %cst_13 [0] : vector<4x256xf32> to vector<256xf32>
    %35 = vector.shape_cast %34 : vector<256xf32> to vector<1x256xf32>
    %c0_14 = arith.constant 0 : index
    %c0_15 = arith.constant 0 : index
    %36 = vector.load %arg8[%c0_14, %c0_15] : memref<1x256xf32, #tpu.memory_space<vmem>>, vector<1x256xf32>
    %37 = arith.mulf %28, %35 : vector<1x256xf32>
    %cst_16 = arith.constant 0.000000e+00 : f32
    %38 = vector.broadcast %cst_16 : f32 to vector<1x256xf32>
    %39 = arith.select %11, %37, %38 : vector<1x256xi1>, vector<1x256xf32>
    %40 = arith.addf %36, %39 : vector<1x256xf32>
    %c0_17 = arith.constant 0 : index
    %c0_18 = arith.constant 0 : index
    %41 = vector.load %arg8[%c0_17, %c0_18] : memref<1x256xf32, #tpu.memory_space<vmem>>, vector<1x256xf32>
    tpu.vector_store %arg8[%c0_17, %c0_18], %40 {strides = array<i32>} : memref<1x256xf32, #tpu.memory_space<vmem>>, vector<1x256xf32>,
    %c0_19 = arith.constant 0 : index
    %c0_20 = arith.constant 0 : index
    %42 = vector.load %arg9[%c0_19, %c0_20] : memref<1x256xf32, #tpu.memory_space<vmem>>, vector<1x256xf32>
    %cst_21 = arith.constant 0.000000e+00 : f32
    %43 = vector.broadcast %cst_21 : f32 to vector<1x256xf32>
    %44 = arith.select %11, %35, %43 : vector<1x256xi1>, vector<1x256xf32>
    %45 = arith.addf %42, %44 : vector<1x256xf32>
    %c0_22 = arith.constant 0 : index
    %c0_23 = arith.constant 0 : index
    %46 = vector.load %arg9[%c0_22, %c0_23] : memref<1x256xf32, #tpu.memory_space<vmem>>, vector<1x256xf32>
    tpu.vector_store %arg9[%c0_22, %c0_23], %45 {strides = array<i32>} : memref<1x256xf32, #tpu.memory_space<vmem>>, vector<1x256xf32>,
    %c0_i32_24 = arith.constant 0 : i32
    %47 = arith.cmpi eq, %arg2, %c0_i32_24 : i32
    %48 = arith.extui %47 : i1 to i32
    %c0_i32_25 = arith.constant 0 : i32
    %49 = arith.cmpi ne, %48, %c0_i32_25 : i32
    scf.if %49 {
      %c0_26 = arith.constant 0 : index
      %c0_27 = arith.constant 0 : index
      %50 = vector.load %arg8[%c0_26, %c0_27] : memref<1x256xf32, #tpu.memory_space<vmem>>, vector<1x256xf32>
      %51 = vector.shape_cast %50 : vector<1x256xf32> to vector<1x1x256xf32>
      %cst_28 = arith.constant dense<0.000000e+00> : vector<1xf32>
      %52 = vector.multi_reduction <add>, %51, %cst_28 [1, 2] : vector<1x1x256xf32> to vector<1xf32>
      %53 = vector.shape_cast %52 : vector<1xf32> to vector<1x1x1xf32>
      %54 = vector.extract %53[0, 0, 0] : f32 from vector<1x1x1xf32>
      %55 = vector.broadcast %54 : f32 to vector<1x1xf32>
      %c0_29 = arith.constant 0 : index
      %c0_30 = arith.constant 0 : index
      %c0_31 = arith.constant 0 : index
      %c0_32 = arith.constant 0 : index
      %56 = vector.load %arg6[%c0_29, %c0_30, %c0_31, %c0_32] : memref<1x1x1x1xf32, #tpu.memory_space<vmem>>, vector<1x1x1x1xf32>
      %57 = vector.shape_cast %56 : vector<1x1x1x1xf32> to vector<1x1xf32>
      %58 = vector.shape_cast %55 : vector<1x1xf32> to vector<1x1x1x1xf32>
      tpu.vector_store %arg6[%c0_29, %c0_30, %c0_31, %c0_32], %58 {strides = array<i32>} : memref<1x1x1x1xf32, #tpu.memory_space<vmem>>, vector<1x1x1x1xf32>,
      %c0_33 = arith.constant 0 : index
      %c0_34 = arith.constant 0 : index
      %59 = vector.load %arg9[%c0_33, %c0_34] : memref<1x256xf32, #tpu.memory_space<vmem>>, vector<1x256xf32>
      %60 = vector.shape_cast %59 : vector<1x256xf32> to vector<1x1x256xf32>
      %cst_35 = arith.constant dense<0.000000e+00> : vector<1xf32>
      %61 = vector.multi_reduction <add>, %60, %cst_35 [1, 2] : vector<1x1x256xf32> to vector<1xf32>
      %62 = vector.shape_cast %61 : vector<1xf32> to vector<1x1x1xf32>
      %63 = vector.extract %62[0, 0, 0] : f32 from vector<1x1x1xf32>
      %64 = vector.broadcast %63 : f32 to vector<1x1xf32>
      %c0_36 = arith.constant 0 : index
      %c0_37 = arith.constant 0 : index
      %c0_38 = arith.constant 0 : index
      %c0_39 = arith.constant 0 : index
      %65 = vector.load %arg7[%c0_36, %c0_37, %c0_38, %c0_39] : memref<1x1x1x1xf32, #tpu.memory_space<vmem>>, vector<1x1x1x1xf32>
      %66 = vector.shape_cast %65 : vector<1x1x1x1xf32> to vector<1x1xf32>
      %67 = vector.shape_cast %64 : vector<1x1xf32> to vector<1x1x1x1xf32>
      tpu.vector_store %arg7[%c0_36, %c0_37, %c0_38, %c0_39], %67 {strides = array<i32>} : memref<1x1x1x1xf32, #tpu.memory_space<vmem>>, vector<1x1x1x1xf32>,
    } else {
    }
    return
  }
  func.func @transform_0(%arg0: i32, %arg1: i32, %arg2: i32) -> (i32, i32, i32) {
    %c1_i32 = arith.constant 1 : i32
    %0 = arith.muli %arg1, %c1_i32 : i32
    %1 = arith.addi %0, %arg2 : i32
    %c0_i32 = arith.constant 0 : i32
    %c0_i32_0 = arith.constant 0 : i32
    return %arg0, %c0_i32, %1 : i32, i32, i32
  }
  func.func @transform_1(%arg0: i32, %arg1: i32, %arg2: i32) -> (i32, i32, i32) {
    %c1_i32 = arith.constant 1 : i32
    %0 = arith.muli %arg1, %c1_i32 : i32
    %1 = arith.addi %0, %arg2 : i32
    %c0_i32 = arith.constant 0 : i32
    %c0_i32_0 = arith.constant 0 : i32
    return %arg0, %c0_i32, %1 : i32, i32, i32
  }
  func.func @transform_2(%arg0: i32, %arg1: i32, %arg2: i32) -> (i32, i32) {
    %c0_i32 = arith.constant 0 : i32
    %c0_i32_0 = arith.constant 0 : i32
    %c0_i32_1 = arith.constant 0 : i32
    return %c0_i32, %c0_i32_0 : i32, i32
  }
  func.func @transform_3(%arg0: i32, %arg1: i32, %arg2: i32) -> (i32, i32, i32, i32) {
    %c0_i32 = arith.constant 0 : i32
    %c0_i32_0 = arith.constant 0 : i32
    %c0_i32_1 = arith.constant 0 : i32
    return %arg0, %arg1, %c0_i32, %c0_i32_0 : i32, i32, i32, i32
  }
  func.func @transform_4(%arg0: i32, %arg1: i32, %arg2: i32) -> (i32, i32, i32, i32) {
    %c0_i32 = arith.constant 0 : i32
    %c0_i32_0 = arith.constant 0 : i32
    %c0_i32_1 = arith.constant 0 : i32
    return %arg0, %arg1, %c0_i32, %c0_i32_0 : i32, i32, i32, i32
  }
}

</mosaic_0001>

<bundles_post_ra>
// kernel: tpu_custom_call.1
= control target key start
LH: loop header
LB: loop body
LE: loop exit
PB: predicated region body
PF: predicated region fallthrough
CT: control target
= control target key end

     0   :  { %10 = vsyncpa [#allocation5], 0  ;;  %s1054_s0 = inlined_call_operand.hbm [shape: f32[2,4,256], index: 0, kind: input, shape index: {}]   ;;  %s1055_s1 = inlined_call_operand.vmem [shape: s32[2,1,256], index: 1, kind: input, shape index: {}]   ;;  %s1056_s2 = inlined_call_operand.vmem [shape: f32[4,1], index: 2, kind: input, shape index: {}]   ;;  %s1057_s3 = inlined_call_operand.vmem [shape: f32[2,1,1,1], index: 3, kind: output, shape index: {0}]   ;;  %s1058_s4 = inlined_call_operand.vmem [shape: f32[2,1,1,1], index: 4, kind: output, shape index: {1}]  }
   0x1   :  { %12 = vsyncpa [#allocation5 + $0x1], 0  ;;  %s856_s15 = smov 0   ;;  %s858_s16 = smov 0  }
   0x2   :  { %s860_s17 = smov 0   ;;  %s862_s18 = smov 0  }
   0x3   :  { %s864_s19 = smov 0   ;;  %s866_s20 = smov 0  }
   0x4 LB: > { %s662_s21 = sadd.s32 4294967295, %s825_s20   ;;  %s37_s22 = sadd.s32 1, %s821_s19  ;;  %s825_s20 = sphi %s866_s20, %s18_s20   ;;  %s821_s19 = sphi %s864_s19, %s1074_s19   ;;  %s817_s18 = sphi %s862_s18, %s1073_s18   ;;  %s813_s17 = sphi %s860_s17, %s1072_s17   ;;  %s809_s16 = sphi %s858_s16, %s1071_s16   ;;  %s805_s15 = sphi %s856_s15, %s1070_s15  }
   0x5   : > { %p39_p0 = scmp.ge.s32.totalorder %s37_s22, 2  ;;  %s48_s23 = sadd.s32 1, %s813_s17 }
   0x6   : > { %p55_p1 = scmp.ne.s32.totalorder %s813_s17, %s809_s16  ;;  %p56_p2 = scmp.eq.s32.totalorder %s825_s20, 0 }
   0x7   : > { %s1076_s22 = smov (%p39_p0, %s37_s22), 0  ;;  %p61_p4 = scmp.ne.s32.totalorder %s809_s16, %s805_s15 }
   0x8   : > { %p892_p3 = por %p56_p2, %p55_p1  ;;  %s43_s25 = ssub.s32 %s821_s19, %s1076_s22 }
   0x9   : > { %p62_p5 = scmp.eq.s32.totalorder %s662_s21, 0  ;;  %p46_p6 = scmp.eq.s32.totalorder %s43_s25, 0 }
   0xa   : > { %p685_p8 = scmp.lt.s32.totalorder %s825_s20, 2  ;;  %s195_s28 = sand.u32 1, %s813_s17  }
   0xb   : > { %p899_p7 = por %p62_p5, %p61_p4  ;;  %s674_s29 = sshll.u32 %s821_s19, 7 }
   0xc   : > { %s905_s27 = scalar_select %p46_p6, %s813_s17, %s48_s23  }
   0xd   : > { %s666_s30 = sshll.u32 %s195_s28, 3  ;;  %s912_s7 = scalar_lea.hbm %s1054_s0, %s674_s29 }
   0xe   : > { %s199_s8 = scalar_lea.vmem [#allocation4], %s666_s30  ;;  %p916_p9 = pnand %p685_p8, %p892_p3 }
   0xf   : > { %s210_s9 = sshll.u32 %s199_s8, 4  ;;  %s196_s11 = scalar_lea.sflag [#allocation5], %s195_s28  ;;  %s920_s9 = int_to_ptr.vmem [resolvable:$true] %s210_s9 }
  0x10   : > { %s745_s12 = scalar_lea.hbm %s912_s7, 128  ;;  %p747_p13 = pneg %p916_p9 }
  0x11   : > { %p746_p12 = scmp.ne.s32.totalorder %s912_s7, %s745_s12  ;;  %s750_s15 = scalar_lea.hbm %s1054_s0, 256 }
  0x12   : > { %p751_p2 = scmp.lt.u32.totalorder %s912_s7, %s1054_s0  ;;  %p752_p3 = scmp.lt.u32.totalorder %s750_s15, %s745_s12 }
  0x13   : > { %p748_p0 = pnand %p747_p13, %p746_p12  ;;  %p754_p5 = scmp.lt.u32.totalorder %s745_s12, %s912_s7 }
  0x14   : > { %p753_p4 = por %p752_p3, %p751_p2 }
  0x15   : > { %p749_p1 = pneg %p748_p0 }
  0x16   : > { %p755_p6 = por %p754_p5, %p753_p4 }
  0x18   : > { %p756_p8 = pnand %p755_p6, %p749_p1 }
  0x1a   : > { %759 = shalt.err (!%p756_p8)
}
  0x1b   : > { %s760_s24 = scalar_lea.vmem %s920_s9, 128  ;;  %s827_s25 = smov [#allocation4]  }
  0x1c   : > { %p761_p12 = scmp.ne.s32.totalorder %s920_s9, %s760_s24  ;;  %s765_s28 = sshll.u32 %s827_s25, 4  ;;  %s766_s28 = int_to_ptr.vmem [resolvable:$false] %s765_s28 }
  0x1d   : > { %s767_s29 = scalar_lea.vmem %s766_s28, 256  ;;  %p768_p11 = scmp.lt.s32.totalorder %s920_s9, %s766_s28 }
  0x1e   : > { %p763_p0 = pnand %p761_p12, %p747_p13  ;;  %p769_p2 = scmp.lt.s32.totalorder %s767_s29, %s760_s24 }
  0x20   : > { %p764_p10 = pneg %p763_p0  ;;  %p770_p3 = por %p769_p2, %p768_p11 }
  0x22   : > { %p771_p4 = pnand %p770_p3, %p764_p10 }
  0x24   : > { %774 = shalt.err (!%p771_p4)
}
  0x25   : > { %684 = dma.hbm_to_vmem [thread:$0]  (!%p916_p9), %s912_s7, 128, %s920_s9, %s196_s11  }
  0x26   : > { %p1062_p1 = scmp.lt.s32.totalorder %s825_s20, 3  ;;  %p1063_p5 = scmp.ge.s32.totalorder %s825_s20, 1 }
  0x28   : > { %p230_p13 = pnand %p1063_p5, %p1062_p1 }
  0x29   : > { %s235_s30 = sand.u32 (!%p230_p13), 1, %s809_s16  }
  0x2a   : > { %233 = sbr.rel (%p230_p13) target bundleno = 425 (0x1a9), region = 32  ;;  %s670_s5 = sshll.u32 (!%p230_p13), %s235_s30, 3 }
  0x2b   : > { %s236_s6 = scalar_lea.sflag (!%p230_p13), [#allocation5], %s235_s30  ;;  %s239_s8 = scalar_lea.vmem (!%p230_p13), [#allocation4], %s670_s5 }
  0x31   : > { %800 = dma.done.wait (%p899_p7), %s236_s6, 128  }
  0x32   : > { %802 = vsyncadd (%p899_p7), %s236_s6, 4294967168  ;;  %v309_v0 = vlaneseq  ;;  %v828_v1 = vmov 0   ;;  %v829_v3 = vmov 0.0   ;;  %v399_v4 = vld [vmem:[%s1056_s2] sm:$0xf]  ;;  %v315_v5 = vld [vmem:[%s239_s8] sm:$0xff] }
  0x33   : > { %737 = vset.pattern.permute.xlu0 %v828_v1  ;;  %v321_v6 = vcombine.high %v315_v5, %v315_v5  ;;  %vm323_vm1 = vcmask 1043456   ;;  %p284_p7 = scmp.lt.s32.totalorder %s817_s18, 1  ;;  %vm486_vm7 = vcmask 1040384   ;;  %vm500_vm8 = vcmask 0  }
  0x34   : > { %vm958_vm0 = vcmp.lt.s32.totalorder %v309_v0, 256  ;;  %402 = vperm.xlu0 %737, %v399_v4   ;;  %v324_v7 = vsel %vm323_vm1, %v315_v5, -inf  ;;  %v976_v26 = vshrl.u32 %v309_v0, 7 }
  0x35   : > { %313 = vst.msk [vmem:[#allocation2] sm:$0x3] %vm958_vm0, %v829_v3  ;;  %314 = vst.msk [vmem:[#allocation3] sm:$0x3] %vm958_vm0, %v829_v3  ;;  %v331_v8 = vsel %vm323_vm1, %v321_v6, -inf  ;;  %v325_v9 = vrot.slane %v324_v7, 4 }
  0x36   : > { %v332_v10 = vrot.slane %v331_v8, 4  ;;  %s1078_s18 = smov (!%p284_p7, %s817_s18), 1  ;;  %v984_v29 = vsub.s32 0, %v976_v26  ;;  %v987_v30 = vsub.s32 1, %v976_v26 }
  0x37   : > { %v326_v11 = vmax.f32 %v324_v7, %v325_v9  ;;  %s671_s26 = sshll.u32 %s1078_s18, 1  ;;  %v830_v9 = vmov 1966171168   ;;  %s298_s15 = scalar_lea.vmem %s1057_s3, %s1078_s18 }
  0x38   : > { %v333_v12 = vmax.f32 %v331_v8, %v332_v10  ;;  %s290_s12 = scalar_lea.vmem %s1055_s1, %s671_s26  ;;  %v428_v10 = vunpack.c.l.s4 %v830_v9  ;;  %s304_s25 = scalar_lea.vmem %s1058_s4, %s1078_s18 }
  0x39   : > { %v327_v13 = vrot.slane %v326_v11, 2  ;;  %v989_v32 = vld [vmem:[%s290_s12] sm:$0x3] }
  0x3a   : > { %v334_v14 = vrot.slane %v333_v12, 2  ;;  %v371_v35 = vrot.slane %v989_v32, %v984_v29  ;;  %v375_v36 = vrot.slane %v989_v32, %v987_v30  ;;  %vm317_vm4 = vcmp.ge.s32.totalorder %v989_v32, 0 }
  0x3b   : > { %v328_v15 = vmax.f32 %v326_v11, %v327_v13  ;;  %vm318_vm5 = vcmp.ne.s32.totalorder %v989_v32, 255 }
  0x3c   : > { %v335_v16 = vmax.f32 %v333_v12, %v334_v14  ;;  %vm996_vm2 = vcmp.eq.s32.totalorder %v976_v26, %v371_v35  ;;  %vm1001_vm3 = vcmp.eq.s32.totalorder %v976_v26, %v375_v36  ;;  %vm319_vm6 = vmand %vm317_vm4, %vm318_vm5  ;;  %v421_v41 = vld [vmem:[#allocation2] sm:$0x3] }
  0x3d   : > { %v329_v17 = vrot.slane %v328_v15, 1 }
  0x3e   : > { %v336_v18 = vrot.slane %v335_v16, 1 }
  0x3f   : > { %v330_v19 = vmax.f32 %v328_v15, %v329_v17 }
  0x40   : > { %v337_v20 = vmax.f32 %v335_v16, %v336_v18 }
  0x42   : > { %v340_v21 = vcombine.low %v330_v19, %v337_v20  ;;  %v429_v19 = vunpack.c.0.s8 %v428_v10 }
  0x44   : > { %v342_v22 = vsub.f32 %v315_v5, %v340_v21 }
  0x46   : > { %v343_v23 = vmul.f32 1.442695, %v342_v22  ;;  %v379_v38 = vcombine.high %v342_v22, %v342_v22  ;;  %v381_v43 = vsel %vm996_vm2, %v342_v22, 0.0 }
  0x47   : > { %v383_v47 = vsel %vm323_vm1, %v381_v43, 0.0 }
  0x48   : > { %739 = vpow2.f32 %v343_v23  ;;  %v382_v44 = vsel %vm1001_vm3, %v379_v38, 0.0  ;;  %v384_v51 = vrot.slane %v383_v47, 4 }
  0x49   : > { %v390_v48 = vsel %vm323_vm1, %v382_v44, 0.0 }
  0x4a   : > { %v391_v52 = vrot.slane %v390_v48, 4  ;;  %v385_v55 = vadd.f32 %v384_v51, %v383_v47 }
  0x4c   : > { %v392_v56 = vadd.f32 %v391_v52, %v390_v48  ;;  %v386_v57 = vrot.slane %v385_v55, 2 }
  0x4e   : > { %v393_v58 = vrot.slane %v392_v56, 2  ;;  %v387_v59 = vadd.f32 %v386_v57, %v385_v55 }
  0x50   : > { %v394_v60 = vadd.f32 %v393_v58, %v392_v56  ;;  %v388_v0 = vrot.slane %v387_v59, 1 }
  0x52   : > { %v740_v24 = vpop.eup %739  ;;  %v395_v1 = vrot.slane %v394_v60, 1  ;;  %v389_v13 = vadd.f32 %v388_v0, %v387_v59 }
  0x53   : > { %v346_v25 = vcombine.high %v740_v24, %v740_v24  ;;  %v348_v27 = vsel %vm323_vm1, %v740_v24, 0.0 }
  0x54   : > { %v349_v31 = vrot.slane %v348_v27, 4  ;;  %v396_v14 = vadd.f32 %v395_v1, %v394_v60 }
  0x55   : > { %v355_v28 = vsel %vm323_vm1, %v346_v25, 0.0 }
  0x56   : > { %v356_v33 = vrot.slane %v355_v28, 4  ;;  %v350_v34 = vadd.f32 %v349_v31, %v348_v27  ;;  %v432_v27 = vsub.s32 %v429_v19, %v976_v26 }
  0x58   : > { %v357_v37 = vadd.f32 %v356_v33, %v355_v28  ;;  %v351_v39 = vrot.slane %v350_v34, 2 }
  0x5a   : > { %v358_v42 = vrot.slane %v357_v37, 2  ;;  %v352_v45 = vadd.f32 %v351_v39, %v350_v34  ;;  %v449_v39 = vld [vmem:[#allocation3] sm:$0x3] }
  0x5c   : > { %v359_v46 = vadd.f32 %v358_v42, %v357_v37  ;;  %v353_v49 = vrot.slane %v352_v45, 1 }
  0x5e   : > { %v360_v50 = vrot.slane %v359_v46, 1  ;;  %v354_v53 = vadd.f32 %v353_v49, %v352_v45 }
  0x60   : > { %v361_v54 = vadd.f32 %v360_v50, %v359_v46  ;;  %741 = vlog2.f32 %v354_v53 }
  0x62   : > { %743 = vlog2.f32 %v361_v54 }
  0x6a   : > { %v742_v5 = vpop.eup %741 }
  0x6b   : > { %v363_v15 = vmul.f32 0.6931472, %v742_v5 }
  0x6c   : > { %v744_v8 = vpop.eup %743 }
  0x6d   : > { %v365_v16 = vmul.f32 0.6931472, %v744_v8  ;;  %v397_v22 = vsub.f32 %v363_v15, %v389_v13 }
  0x6f   : > { %v398_v23 = vsub.f32 %v365_v16, %v396_v14 }
  0xb3   : > { %v403_v61 = vpop.permute.xlu0 %402 }
  0xb4   : > { %v405_v62 = vsel %vm996_vm2, %v403_v61, 0.0  ;;  %v406_v63 = vsel %vm1001_vm3, %v403_v61, 0.0 }
  0xb5   : > { %v407_v3 = vsel %vm323_vm1, %v405_v62, 0.0  ;;  %v414_v4 = vsel %vm323_vm1, %v406_v63, 0.0 }
  0xb6   : > { %v408_v6 = vrot.slane %v407_v3, 4  ;;  %v415_v7 = vrot.slane %v414_v4, 4 }
  0xb8   : > { %v409_v11 = vadd.f32 %v408_v6, %v407_v3  ;;  %v416_v12 = vadd.f32 %v415_v7, %v414_v4 }
  0xba   : > { %v410_v17 = vrot.slane %v409_v11, 2  ;;  %v417_v18 = vrot.slane %v416_v12, 2 }
  0xbc   : > { %v411_v20 = vadd.f32 %v410_v17, %v409_v11  ;;  %v418_v21 = vadd.f32 %v417_v18, %v416_v12 }
  0xbe   : > { %v412_v24 = vrot.slane %v411_v20, 1  ;;  %v419_v25 = vrot.slane %v418_v21, 1 }
  0xc0   : > { %v413_v28 = vadd.f32 %v412_v24, %v411_v20  ;;  %v420_v31 = vadd.f32 %v419_v25, %v418_v21 }
  0xc2   : > { %v422_v33 = vmul.f32 %v413_v28, %v397_v22  ;;  %v423_v34 = vmul.f32 %v420_v31, %v398_v23  ;;  %v452_v35 = vcombine.low %v413_v28, %v420_v31 }
  0xc4   : > { %v426_v36 = vcombine.low %v422_v33, %v423_v34  ;;  %v459_v37 = vrot.slane %v452_v35, %v432_v27 }
  0xc6   : > { %v433_v38 = vrot.slane %v426_v36, %v432_v27  ;;  %v466_v40 = vrot.slane %v459_v37, %v432_v27 }
  0xc8   : > { %v440_v42 = vrot.slane %v433_v38, %v432_v27  ;;  %v468_v43 = vsel %vm319_vm6, %v466_v40, 0.0 }
  0xc9   : > { %v469_v44 = vadd.f32 %v468_v43, %v449_v39 }
  0xca   : > { %v442_v26 = vsel %vm319_vm6, %v440_v42, 0.0 }
  0xcb   : > { %v443_v45 = vadd.f32 %v442_v26, %v421_v41  ;;  %470 = vst.msk [vmem:[#allocation3] sm:$0x3] %vm958_vm0, %v469_v44 }
  0xcd   : > { %448 = vst.msk [vmem:[#allocation2] sm:$0x3] %vm958_vm0, %v443_v45 }
  0xd2   : > { %v502_v32 = vld [vmem:[#allocation3] sm:$0x3] }
  0xd3   : > { %v507_v46 = vrot.slane %v502_v32, %v984_v29  ;;  %v511_v47 = vrot.slane %v502_v32, %v987_v30 }
  0xd4   : > { %v474_v48 = vld [vmem:[#allocation2] sm:$0x3] }
  0xd5   : > { %v514_v49 = vsel %vm486_vm7, %v507_v46, 0.0  ;;  %v515_v50 = vsel %vm486_vm7, %v511_v47, 0.0  ;;  %v479_v51 = vrot.slane %v474_v48, %v984_v29  ;;  %v483_v52 = vrot.slane %v474_v48, %v987_v30 }
  0xd6   : > { %v516_v53 = vadd.f32 %v515_v50, %v514_v49 }
  0xd7   : > { %v487_v54 = vsel %vm486_vm7, %v479_v51, 0.0  ;;  %v488_v55 = vsel %vm486_vm7, %v483_v52, 0.0 }
  0xd8   : > { %517 = vadd.xlane.f32.xlu1 %v516_v53  ;;  %v489_v56 = vadd.f32 %v488_v55, %v487_v54 }
  0xda   : > { %490 = vadd.xlane.f32.xlu0 %v489_v56 }
 0x165   : > { %v518_v2 = vpop.xlane.xlu1 %517 }
 0x166   : > { %v519_v57 = vrot.slane %v518_v2, 4 }
 0x167   : > { %v491_v58 = vpop.xlane.xlu0 %490 }
 0x168   : > { %v520_v59 = vadd.f32 %v519_v57, %v518_v2  ;;  %v492_v60 = vrot.slane %v491_v58, 4 }
 0x16a   : > { %v521_v61 = vrot.slane %v520_v59, 2  ;;  %v493_v62 = vadd.f32 %v492_v60, %v491_v58 }
 0x16c   : > { %v522_v63 = vadd.f32 %v521_v61, %v520_v59  ;;  %v494_v0 = vrot.slane %v493_v62, 2 }
 0x16e   : > { %v495_v29 = vadd.f32 %v494_v0, %v493_v62  ;;  %v523_v1 = vrot.slane %v522_v63, 1 }
 0x170   : > { %v496_v30 = vrot.slane %v495_v29, 1  ;;  %v524_v4 = vadd.f32 %v523_v1, %v522_v63 }
 0x172   : > { %v497_v3 = vadd.f32 %v496_v30, %v495_v29 }
 0x174   : > { %675 = vpush %v497_v3 }
 0x175   : > { %677 = vpush %v524_v4 }
 0x1a5   : > { %s676_s21 = spop %675 }
 0x1a6   : > { %v499_v5 = vstv %s676_s21  ;;  %s678_s28 = spop %677 }
 0x1a7   : > { %501 = vst.msk [vmem:[%s298_s15] sm:$0x1] %vm500_vm8, %v499_v5  ;;  %v526_v6 = vstv %s678_s28 }
 0x1a8   : > { %527 = vst.msk [vmem:[%s304_s25] sm:$0x1] %vm500_vm8, %v526_v6 }
 0x1a9 PF: > { %s18_s20 = sadd.s32 1, %s825_s20   ;;  %s1070_s15 = smov %s809_s16 }
 0x1aa   : > { %p15_p9 = scmp.ge.s32.totalorder %s18_s20, 4   ;;  %s1071_s16 = smov %s813_s17 }
 0x1ab   : > { %s1072_s17 = smov %s905_s27  ;;  %s1073_s18 = smov %s821_s19 }
 0x1ac   : > { %s1074_s19 = smov %s1076_s22  ;;  %17 = sbr.rel (!%p15_p9) target bundleno = 4 (0x4), region = 95 }
 0x1b3   :  { %569 = vsyncpa [#allocation5], 1 }
 0x1b4   :  { %571 = vsyncpa [#allocation5 + $0x1], 1 }

</bundles_post_ra>
